<compile_context>
chip_gen: v5e
topology: v5e:2x2
jax: 0.10.0
libtpu: 0.0.40
codegen_flags: <defaults>
</compile_context>

<pallas_src>
import functools

import jax
import jax.numpy as jnp
from jax.experimental import pallas as pl
from jax.experimental.pallas import tpu as pltpu


def _round_up(x, m):
    return ((x + m - 1) // m) * m


def _vmem_limit_bytes():
    """Generation-aware scoped-VMEM limit (v7x: 64 MiB physical -> ~48 MiB;
    v5e/v6e: 128 MiB physical -> ~96 MiB)."""
    try:
        cap = pltpu.get_tpu_info().vmem_capacity_bytes
    except Exception:
        cap = 64 * 1024 * 1024  # conservative default (v7x per-TC)
    limit = min(96 * 1024 * 1024, (3 * cap) // 4)
    return max(limit, 32 * 1024 * 1024)


def _choose_tile_n(n, c, itemsize, budget):
    """Largest batch tile whose double-buffered input DMAs plus in-kernel f32
    temporaries stay inside `budget` bytes of VMEM, preferring multiples of 128
    rows and keeping >= 2 (ideally >= 4) grid steps for megacore sharding."""
    c_pad = _round_up(c, 128)  # lane padding of the (T, C) tiles
    # 2 inputs x 2 pipeline buffers at native dtype + ~3 f32 tile-sized temps
    # (f32 logits cast, exp temp, picked/select temp) per row.
    bytes_per_row = 2 * 2 * c_pad * itemsize + 3 * c_pad * 4
    rows = max(8, budget // bytes_per_row)
    if rows >= 128:
        rows = (rows // 128) * 128
    else:
        # huge-C fallback; real fix is the class-axis tiling TODO above
        rows = max(8, (rows // 8) * 8)
    rows = min(rows, 4096)

    # keep the grid >= 2 (ideally >= 4) steps so v7x's two TensorCores both work
    if n >= 4 * 128:
        rows = min(rows, max(128, ((n // 4) // 128) * 128))
    elif n >= 2 * 128:
        rows = min(rows, 128)

    # don't over-pad tiny batches
    rows = min(rows, _round_up(n, 8))
    return max(8, rows)


def _ce_soft_label_kernel(logits_ref, target_ref, out_ref, *, n_rows):
    # Only the logits path needs f32 (exp / logsumexp accuracy).
    logits = logits_ref[...].astype(jnp.float32)   # (T, C) f32
    target = target_ref[...]                       # (T, C) native dtype (compares exact)
    t_n, c = logits.shape

    # (1, C) column index; broadcasts against (T, C) compares (low vreg pressure).
    col = jax.lax.broadcasted_iota(jnp.int32, (1, c), 1)

    # ---- hard label from soft target: (first) argmax along classes ----
    tmax = jnp.max(target, axis=1, keepdims=True)                              # (T, 1)
    first_idx = jnp.min(jnp.where(target == tmax, col, c), axis=1,
                        keepdims=True)                                         # (T, 1)

    # ---- stable log-softmax pieces, no (T, C) log_probs / one_hot temporaries ----
    m = jnp.max(logits, axis=1, keepdims=True)                                 # (T, 1)
    lse = jnp.log(jnp.sum(jnp.exp(logits - m), axis=1, keepdims=True))         # (T, 1)
    picked = jnp.sum(jnp.where(col == first_idx, logits, 0.0), axis=1,
                     keepdims=True)                                            # (T, 1)

    # lane-dense (1, T) slab for an unmasked-as-possible store
    row_loss = (m + lse - picked).reshape(1, t_n)                              # (1, T)

    # ---- mask padded rows (partial last tile) to exactly 0 ----
    lane = jax.lax.broadcasted_iota(jnp.int32, (1, t_n), 1)
    global_row = pl.program_id(0) * t_n + lane
    out_ref[...] = jnp.where(global_row < n_rows, row_loss, 0.0)


def ce_for_soft_label(logits, target, reduction="mean", pos_weight=None, tile_n=None):
    """Pallas implementation of CEForSoftLabel.forward (logits/target: [N, C]).
    `pos_weight` is accepted for signature parity and ignored, as in the module."""
    del pos_weight
    if reduction not in ("none", "sum", "mean"):
        raise ValueError(
            "unrecognized option, expect reduction to be one of none, mean, sum"
        )
    n, c = logits.shape
    vmem_limit = _vmem_limit_bytes()
    if tile_n is None:
        itemsize = max(jnp.dtype(logits.dtype).itemsize,
                       jnp.dtype(target.dtype).itemsize)
        tile_n = _choose_tile_n(n, c, itemsize, vmem_limit // 2)
    tile_n = max(8, _round_up(min(tile_n, _round_up(n, 8)), 8))
    num_tiles = pl.cdiv(n, tile_n)

    kernel = functools.partial(_ce_soft_label_kernel, n_rows=n)
    tiled_losses = pl.pallas_call(
        kernel,
        out_shape=jax.ShapeDtypeStruct((num_tiles, tile_n), jnp.float32),
        grid=(num_tiles,),
        in_specs=[
            pl.BlockSpec((tile_n, c), lambda i: (i, 0)),
            pl.BlockSpec((tile_n, c), lambda i: (i, 0)),
        ],
        out_specs=pl.BlockSpec((1, tile_n), lambda i: (i, 0)),
        compiler_params=pltpu.CompilerParams(
            dimension_semantics=("parallel",),      # megacore-shardable on v7x
            vmem_limit_bytes=vmem_limit,
        ),
    )(logits, target)

    if reduction == "none":
        return tiled_losses.reshape(-1)[:n]
    total = jnp.sum(tiled_losses)        # padded rows were written as exact zeros
    if reduction == "sum":
        return total
    return total / jnp.float32(n)        # divide by the true N, not padded N


def _reference(logits, target, reduction="mean"):
    """Pure-JAX reference mirroring the PyTorch module."""
    one_hot = jax.nn.one_hot(jnp.argmax(target, axis=1), target.shape[1],
                             dtype=jnp.float32)
    log_probs = jax.nn.log_softmax(logits.astype(jnp.float32), axis=1)
    loss = jnp.sum(-log_probs * one_hot, axis=1)
    if reduction == "none":
        return loss
    if reduction == "sum":
        return jnp.sum(loss)
    return jnp.mean(loss)


if __name__ == "__main__":
    key = jax.random.PRNGKey(0)
    k1, k2, k3, k4 = jax.random.split(key, 4)

    N, C = 20, 32  # small batch of per-sample class logits / soft labels
    logits = jax.random.normal(k1, (N, C), dtype=jnp.float32)
    # soft labels: rows on the simplex
    target = jax.nn.softmax(jax.random.normal(k2, (N, C), dtype=jnp.float32), axis=1)

    # default tiling (single tile covers N here)
    loss_mean = ce_for_soft_label(logits, target, reduction="mean")
    loss_none = ce_for_soft_label(logits, target, reduction="none")
    loss_sum = ce_for_soft_label(logits, target, reduction="sum")

    # forced small tile -> multi-tile grid with a partial last tile (mask path)
    loss_mean_t = ce_for_soft_label(logits, target, reduction="mean", tile_n=8)
    loss_none_t = ce_for_soft_label(logits, target, reduction="none", tile_n=8)
    loss_sum_t = ce_for_soft_label(logits, target, reduction="sum", tile_n=8)

    # bf16 inputs go into the kernel uncast (per-tile cast happens in VMEM)
    loss_bf16 = ce_for_soft_label(logits.astype(jnp.bfloat16),
                                  target.astype(jnp.bfloat16), reduction="mean")

    # moderate multi-tile default path (exercises >=2 tiles + lane-dense stores)
    N2, C2 = 300, 64
    logits2 = jax.random.normal(k3, (N2, C2), dtype=jnp.float32)
    target2 = jax.nn.softmax(jax.random.normal(k4, (N2, C2), dtype=jnp.float32), axis=1)
    loss2_mean = ce_for_soft_label(logits2, target2, reduction="mean")
    loss2_none = ce_for_soft_label(logits2, target2, reduction="none")

    jax.block_until_ready((loss_mean, loss_none, loss_sum,
                           loss_mean_t, loss_none_t, loss_sum_t,
                           loss_bf16, loss2_mean, loss2_none))

    # sanity checks against pure-JAX reference
    assert jnp.allclose(loss_mean, _reference(logits, target, "mean"), atol=2e-5)
    assert jnp.allclose(loss_none, _reference(logits, target, "none"), atol=2e-5)
    assert jnp.allclose(loss_sum, _reference(logits, target, "sum"), atol=2e-5)
    assert jnp.allclose(loss_mean_t, _reference(logits, target, "mean"), atol=2e-5)
    assert jnp.allclose(loss_none_t, _reference(logits, target, "none"), atol=2e-5)
    assert jnp.allclose(loss_sum_t, _reference(logits, target, "sum"), atol=2e-5)
    assert jnp.allclose(loss2_mean, _reference(logits2, target2, "mean"), atol=2e-5)
    assert jnp.allclose(loss2_none, _reference(logits2, target2, "none"), atol=2e-5)

    ref_bf16 = _reference(logits.astype(jnp.bfloat16).astype(jnp.float32),
                          target.astype(jnp.bfloat16).astype(jnp.float32), "mean")
    assert jnp.allclose(loss_bf16, ref_bf16, atol=1e-4)

    print("KERNEL_OK")
</pallas_src>

<mosaic_0001>
module attributes {stable_mosaic.version = 11 : i64} {
  func.func @_ce_soft_label_kernel(%arg0: i32, %arg1: memref<24x32xf32, #tpu.memory_space<vmem>>, %arg2: memref<24x32xf32, #tpu.memory_space<vmem>>, %arg3: memref<1x24xf32, #tpu.memory_space<vmem>>) attributes {dimension_semantics = [#tpu.dimension_semantics<parallel>], iteration_bounds = array<i64: 1>, scalar_prefetch = 0 : i64, scratch_operands = 0 : i64, tpu.core_type = #tpu.core_type<tc>, window_params = [{transform_indices = @transform_0, window_bounds = array<i64: 24, 32>}, {transform_indices = @transform_1, window_bounds = array<i64: 24, 32>}, {transform_indices = @transform_2, window_bounds = array<i64: 1, 24>}]} {
    %c0 = arith.constant 0 : index
    %c0_0 = arith.constant 0 : index
    %0 = vector.load %arg1[%c0, %c0_0] : memref<24x32xf32, #tpu.memory_space<vmem>>, vector<24x32xf32>
    %c0_1 = arith.constant 0 : index
    %c0_2 = arith.constant 0 : index
    %1 = vector.load %arg2[%c0_1, %c0_2] : memref<24x32xf32, #tpu.memory_space<vmem>>, vector<24x32xf32>
    %2 = tpu.iota {dimensions = array<i32: 1>} : vector<1x32xi32>
    %cst = arith.constant dense<0xFF800000> : vector<24xf32>
    %3 = vector.multi_reduction <maximumf>, %1, %cst [1] : vector<24x32xf32> to vector<24xf32>
    %4 = vector.shape_cast %3 : vector<24xf32> to vector<24x1xf32>
    %5 = vector.broadcast %4 : vector<24x1xf32> to vector<24x32xf32>
    %6 = arith.cmpf oeq, %1, %5 : vector<24x32xf32>
    %c32_i32 = arith.constant 32 : i32
    %7 = vector.shape_cast %2 : vector<1x32xi32> to vector<1x32xi32>
    %8 = vector.broadcast %7 : vector<1x32xi32> to vector<24x32xi32>
    %9 = vector.broadcast %c32_i32 : i32 to vector<24x32xi32>
    %10 = arith.select %6, %8, %9 : vector<24x32xi1>, vector<24x32xi32>
    %cst_3 = arith.constant dense<2147483647> : vector<24xi32>
    %11 = vector.multi_reduction <minsi>, %10, %cst_3 [1] : vector<24x32xi32> to vector<24xi32>
    %12 = vector.shape_cast %11 : vector<24xi32> to vector<24x1xi32>
    %cst_4 = arith.constant dense<0xFF800000> : vector<24xf32>
    %13 = vector.multi_reduction <maximumf>, %0, %cst_4 [1] : vector<24x32xf32> to vector<24xf32>
    %14 = vector.shape_cast %13 : vector<24xf32> to vector<24x1xf32>
    %15 = vector.broadcast %14 : vector<24x1xf32> to vector<24x32xf32>
    %16 = arith.subf %0, %15 : vector<24x32xf32>
    %17 = math.exp %16 : vector<24x32xf32>
    %cst_5 = arith.constant dense<0.000000e+00> : vector<24xf32>
    %18 = vector.multi_reduction <add>, %17, %cst_5 [1] : vector<24x32xf32> to vector<24xf32>
    %19 = vector.shape_cast %18 : vector<24xf32> to vector<24x1xf32>
    %20 = math.log %19 : vector<24x1xf32>
    %21 = vector.broadcast %2 : vector<1x32xi32> to vector<24x32xi32>
    %22 = vector.broadcast %12 : vector<24x1xi32> to vector<24x32xi32>
    %23 = arith.cmpi eq, %21, %22 : vector<24x32xi32>
    %cst_6 = arith.constant 0.000000e+00 : f32
    %24 = vector.broadcast %cst_6 : f32 to vector<24x32xf32>
    %25 = arith.select %23, %0, %24 : vector<24x32xi1>, vector<24x32xf32>
    %cst_7 = arith.constant dense<0.000000e+00> : vector<24xf32>
    %26 = vector.multi_reduction <add>, %25, %cst_7 [1] : vector<24x32xf32> to vector<24xf32>
    %27 = vector.shape_cast %26 : vector<24xf32> to vector<24x1xf32>
    %28 = arith.addf %14, %20 : vector<24x1xf32>
    %29 = arith.subf %28, %27 : vector<24x1xf32>
    %30 = vector.shape_cast %29 : vector<24x1xf32> to vector<1x24xf32>
    %31 = tpu.iota {dimensions = array<i32: 1>} : vector<1x24xi32>
    %c24_i32 = arith.constant 24 : i32
    %32 = arith.muli %arg0, %c24_i32 : i32
    %33 = vector.broadcast %32 : i32 to vector<1x24xi32>
    %34 = arith.addi %33, %31 : vector<1x24xi32>
    %c20_i32 = arith.constant 20 : i32
    %35 = vector.broadcast %c20_i32 : i32 to vector<1x24xi32>
    %36 = arith.cmpi slt, %34, %35 : vector<1x24xi32>
    %cst_8 = arith.constant 0.000000e+00 : f32
    %37 = vector.broadcast %cst_8 : f32 to vector<1x24xf32>
    %38 = arith.select %36, %30, %37 : vector<1x24xi1>, vector<1x24xf32>
    %c0_9 = arith.constant 0 : index
    %c0_10 = arith.constant 0 : index
    %39 = vector.load %arg3[%c0_9, %c0_10] : memref<1x24xf32, #tpu.memory_space<vmem>>, vector<1x24xf32>
    tpu.vector_store %arg3[%c0_9, %c0_10], %38 {strides = array<i32>} : memref<1x24xf32, #tpu.memory_space<vmem>>, vector<1x24xf32>,
    return
  }
  func.func @transform_0(%arg0: i32) -> (i32, i32) {
    %c0_i32 = arith.constant 0 : i32
    %c0_i32_0 = arith.constant 0 : i32
    return %arg0, %c0_i32 : i32, i32
  }
  func.func @transform_1(%arg0: i32) -> (i32, i32) {
    %c0_i32 = arith.constant 0 : i32
    %c0_i32_0 = arith.constant 0 : i32
    return %arg0, %c0_i32 : i32, i32
  }
  func.func @transform_2(%arg0: i32) -> (i32, i32) {
    %c0_i32 = arith.constant 0 : i32
    %c0_i32_0 = arith.constant 0 : i32
    return %arg0, %c0_i32 : i32, i32
  }
}

</mosaic_0001>

<bundles_post_ra>
// kernel: tpu_custom_call.1
= control target key start
LH: loop header
LB: loop body
LE: loop exit
PB: predicated region body
PF: predicated region fallthrough
CT: control target
= control target key end

     0   :  { %7 = vsyncpa [#allocation3], 0  ;;  %s379_s0 = inlined_call_operand.hbm [shape: f32[20,32], index: 0, kind: input, shape index: {}]   ;;  %s380_s1 = inlined_call_operand.hbm [shape: f32[20,32], index: 1, kind: input, shape index: {}]   ;;  %s381_s2 = inlined_call_operand.hbm [shape: f32[1,24], index: 2, kind: output, shape index: {}]  }
   0x1   :  { %8 = vsyncpa [#allocation6], 0 }
   0x2   :  { %9 = vsyncpa [#allocation4], 0  ;;  %s14_s11 = sshll.u32 %s379_s0, 4  ;;  %s300_s12 = smov [#allocation2]   ;;  %s15_s11 = int_to_ptr.hbm [resolvable:$true] %s14_s11 }
   0x3   :  { %s16_s13 = sshll.u32 %s300_s12, 4  ;;  %s27_s16 = sshll.u32 %s380_s1, 4  ;;  %s17_s13 = int_to_ptr.vmem [resolvable:$true] %s16_s13  ;;  %s28_s16 = int_to_ptr.hbm [resolvable:$true] %s27_s16 }
   0x4   :  { %s301_s17 = smov 128   ;;  %s302_s18 = smov 8  }
   0x5   :  { %22 = dma.hbm_to_vmem [thread:$0]  %s15_s11, 384, %s17_s13, [#allocation3], %s301_s17, %s301_s17, %s302_s18  }
   0x6   :  { %s303_s19 = smov [#allocation5]  }
   0x7   :  { %s29_s20 = sshll.u32 %s303_s19, 4  ;;  %s30_s20 = int_to_ptr.vmem [resolvable:$true] %s29_s20 }
   0x8   :  { %35 = dma.hbm_to_vmem [thread:$0]  %s28_s16, 384, %s30_s20, [#allocation6], %s301_s17, %s301_s17, %s302_s18  }
   0x9   :  { %294 = dma.done.wait [#allocation3], 384  }
   0xa   :  { %295 = vsyncadd [#allocation3], 4294966912 }
   0xb   :  { %296 = dma.done.wait [#allocation6], 384  }
   0xc   :  { %297 = vsyncadd [#allocation6], 4294966912  ;;  %vm52_vm0 = vcmask 261120   ;;  %v47_v0 = vld [vmem:[#allocation5] sm:$0xff]  ;;  %v49_v1 = vld [vmem:[#allocation5 + $0x10] sm:$0xff]  ;;  %v50_v8 = vlaneseq  ;;  %vm177_vm10 = vcmask 130112  }
   0xd   :  { %v53_v2 = vsel %vm52_vm0, %v47_v0, -inf  ;;  %v59_v3 = vsel %vm52_vm0, %v49_v1, -inf  ;;  %v48_v4 = vld [vmem:[#allocation5 + $0x8] sm:$0xff]  ;;  %v339_v19 = vld [vmem:[#allocation2 + $0x8] sm:$0xff]  ;;  %v345_v27 = vld [vmem:[#allocation2 + $0x10] sm:$0xff]  ;;  %vm181_vm11 = vcmask 195712  }
   0xe   :  { %54 = vmax.xlane.f32.xlu0 %v53_v2  ;;  %60 = vmax.xlane.f32.xlu1 %v59_v3  ;;  %v56_v5 = vsel %vm52_vm0, %v48_v4, -inf  ;;  %v329_v6 = vld [vmem:[#allocation2] sm:$0xff]  ;;  %v333_v9 = vand.u32 127, %v50_v8  ;;  %v116_v23 = vsel %vm52_vm0, %v339_v19, -inf  ;;  %v119_v28 = vsel %vm52_vm0, %v345_v27, -inf  ;;  %s304_s0 = smov [#allocation7]  }
   0xf   :  { %v113_v7 = vsel %vm52_vm0, %v329_v6, -inf  ;;  %s192_s1 = sshll.u32 %s304_s0, 4  ;;  %s194_s23 = sshll.u32 %s381_s2, 4  ;;  %vm185_vm13 = vcmask 188416   ;;  %s193_s1 = int_to_ptr.vmem [resolvable:$true] %s192_s1  ;;  %s195_s23 = int_to_ptr.hbm [resolvable:$true] %s194_s23 }
  0x10   :  { %vm170_vm12 = vcmp.lt.s32.totalorder %v333_v9, 20 }
  0x16   :  { %57 = vmax.xlane.f32.xlu0 %v56_v5 }
  0x1e   :  { %114 = vmax.xlane.f32.xlu0 %v113_v7 }
  0x81   :  { %v55_v10 = vpop.xlane.xlu0 %54  ;;  %v61_v14 = vpop.xlane.xlu1 %60 }
  0x82   :  { %vm62_vm1 = vcmp.eq.f32.partialorder %v47_v0, %v55_v10  ;;  %vm64_vm2 = vcmp.eq.f32.partialorder %v49_v1, %v61_v14 }
  0x83   :  { %v65_v11 = vsel %vm62_vm1, %v333_v9, 32  ;;  %v67_v18 = vsel %vm64_vm2, %v333_v9, 32 }
  0x84   :  { %v68_v12 = vsel %vm52_vm0, %v65_v11, 2147483647  ;;  %v98_v22 = vsel %vm52_vm0, %v67_v18, 2147483647 }
  0x85   :  { %v70_v13 = vshra.s32 %v68_v12, 16  ;;  %v100_v25 = vshra.s32 %v98_v22, 16  ;;  %v69_v32 = vand.u32 65535, %v68_v12  ;;  %v99_v45 = vand.u32 65535, %v98_v22 }
  0x87   :  { %v72_v15 = vcvt.s32.f32 %v70_v13  ;;  %v102_v26 = vcvt.s32.f32 %v100_v25  ;;  %v71_v34 = vcvt.s32.f32 %v69_v32  ;;  %v101_v47 = vcvt.s32.f32 %v99_v45 }
  0x88   :  { %v179_v32 = vadd.s32 4294967280, %v333_v9 }
  0x89   :  { %73 = vmin.xlane.f32.xlu1 %v72_v15  ;;  %v58_v16 = vpop.xlane.xlu0 %57 }
  0x8a   :  { %vm63_vm3 = vcmp.eq.f32.partialorder %v48_v4, %v58_v16 }
  0x8b   :  { %v66_v17 = vsel %vm63_vm3, %v333_v9, 32 }
  0x8c   :  { %v83_v20 = vsel %vm52_vm0, %v66_v17, 2147483647 }
  0x8d   :  { %v85_v21 = vshra.s32 %v83_v20, 16  ;;  %v84_v36 = vand.u32 65535, %v83_v20 }
  0x8f   :  { %v87_v24 = vcvt.s32.f32 %v85_v21  ;;  %v86_v40 = vcvt.s32.f32 %v84_v36 }
  0x91   :  { %88 = vmin.xlane.f32.xlu2 %v87_v24  ;;  %117 = vmax.xlane.f32.xlu1 %v116_v23  ;;  %v349_v29 = vpop.xlane.xlu0 %114 }
  0x92   :  { %v122_v30 = vsub.f32 %v329_v6, %v349_v29 }
  0x94   :  { %v125_v31 = vmul.f32 1.442695, %v122_v30 }
  0x96   :  { %210 = vpow2.f32 %v125_v31 }
  0x99   :  { %103 = vmin.xlane.f32.xlu2 %v102_v26 }
  0x9c   :  { %v211_v37 = vpop.eup %210 }
  0x9d   :  { %v131_v41 = vsel %vm52_vm0, %v211_v37, 0.0 }
  0xa1   :  { %120 = vmax.xlane.f32.xlu2 %v119_v28 }
  0xfc   :  { %v74_v33 = vpop.xlane.xlu1 %73 }
  0xfd   :  { %vm75_vm4 = vcmp.eq.f32.partialorder %v72_v15, %v74_v33  ;;  %v80_v56 = vcvt.f32.s32 %v74_v33 }
  0xfe   :  { %v76_v35 = vsel %vm75_vm4, %v71_v34, inf }
  0xff   :  { %77 = vmin.xlane.f32.xlu0 %v76_v35  ;;  %v81_v58 = vshll.u32 %v80_v56, 16 }
 0x104   :  { %v89_v38 = vpop.xlane.xlu2 %88  ;;  %v353_v39 = vpop.xlane.xlu1 %117 }
 0x105   :  { %v123_v42 = vsub.f32 %v339_v19, %v353_v39  ;;  %vm90_vm5 = vcmp.eq.f32.partialorder %v87_v24, %v89_v38  ;;  %v95_v61 = vcvt.f32.s32 %v89_v38 }
 0x106   :  { %v91_v43 = vsel %vm90_vm5, %v86_v40, inf }
 0x107   :  { %v127_v44 = vmul.f32 1.442695, %v123_v42  ;;  %92 = vmin.xlane.f32.xlu1 %v91_v43  ;;  %132 = vadd.xlane.f32.xlu0 %v131_v41  ;;  %v96_v1 = vshll.u32 %v95_v61, 16 }
 0x109   :  { %212 = vpow2.f32 %v127_v44 }
 0x10c   :  { %v104_v46 = vpop.xlane.xlu2 %103 }
 0x10d   :  { %vm105_vm6 = vcmp.eq.f32.partialorder %v102_v26, %v104_v46  ;;  %v110_v4 = vcvt.f32.s32 %v104_v46 }
 0x10e   :  { %v106_v48 = vsel %vm105_vm6, %v101_v47, inf }
 0x10f   :  { %v213_v49 = vpop.eup %212  ;;  %107 = vmin.xlane.f32.xlu2 %v106_v48  ;;  %v111_v10 = vshll.u32 %v110_v4, 16 }
 0x110   :  { %v134_v50 = vsel %vm52_vm0, %v213_v49, 0.0 }
 0x111   :  { %135 = vadd.xlane.f32.xlu1 %v134_v50 }
 0x114   :  { %v121_v51 = vpop.xlane.xlu2 %120 }
 0x115   :  { %v124_v52 = vsub.f32 %v345_v27, %v121_v51 }
 0x117   :  { %v129_v53 = vmul.f32 1.442695, %v124_v52 }
 0x119   :  { %214 = vpow2.f32 %v129_v53 }
 0x11f   :  { %v215_v54 = vpop.eup %214 }
 0x120   :  { %v137_v55 = vsel %vm52_vm0, %v215_v54, 0.0 }
 0x121   :  { %138 = vadd.xlane.f32.xlu2 %v137_v55 }
 0x172   :  { %v78_v57 = vpop.xlane.xlu0 %77 }
 0x173   :  { %v79_v59 = vcvt.f32.s32 %v78_v57 }
 0x175   :  { %v82_v60 = vadd.s32 %v81_v58, %v79_v59 }
 0x177   :  { %vm146_vm7 = vcmp.eq.s32.totalorder %v333_v9, %v82_v60 }
 0x178   :  { %v149_v62 = vsel %vm146_vm7, %v329_v6, 0.0 }
 0x179   :  { %v152_v63 = vsel %vm52_vm0, %v149_v62, 0.0 }
 0x17a   :  { %v93_v0 = vpop.xlane.xlu1 %92  ;;  %153 = vadd.xlane.f32.xlu0 %v152_v63  ;;  %v133_v15 = vpop.xlane.xlu0 %132 }
 0x17b   :  { %v94_v2 = vcvt.f32.s32 %v93_v0 }
 0x17d   :  { %v97_v3 = vadd.s32 %v96_v1, %v94_v2 }
 0x17f   :  { %vm147_vm8 = vcmp.eq.s32.totalorder %v333_v9, %v97_v3 }
 0x180   :  { %v150_v5 = vsel %vm147_vm8, %v339_v19, 0.0 }
 0x181   :  { %v155_v7 = vsel %vm52_vm0, %v150_v5, 0.0 }
 0x182   :  { %v108_v8 = vpop.xlane.xlu2 %107  ;;  %156 = vadd.xlane.f32.xlu1 %v155_v7 }
 0x183   :  { %v109_v11 = vcvt.f32.s32 %v108_v8 }
 0x184   :  { %v136_v14 = vpop.xlane.xlu1 %135 }
 0x185   :  { %v112_v12 = vadd.s32 %v111_v10, %v109_v11  ;;  %216 = vlog2.f32 %v136_v14 }
 0x186   :  { %218 = vlog2.f32 %v133_v15 }
 0x187   :  { %vm148_vm9 = vcmp.eq.s32.totalorder %v333_v9, %v112_v12 }
 0x188   :  { %v151_v6 = vsel %vm148_vm9, %v345_v27, 0.0  ;;  %v175_v27 = vadd.s32 4294967288, %v333_v9 }
 0x189   :  { %v158_v13 = vsel %vm52_vm0, %v151_v6, 0.0 }
 0x18a   :  { %159 = vadd.xlane.f32.xlu2 %v158_v13 }
 0x18b   :  { %v217_v17 = vpop.eup %216 }
 0x18c   :  { %v219_v18 = vpop.eup %218  ;;  %v143_v19 = vmul.f32 0.6931472, %v217_v17 }
 0x18d   :  { %v141_v21 = vmul.f32 0.6931472, %v219_v18 }
 0x18e   :  { %v162_v23 = vadd.f32 %v143_v19, %v353_v39 }
 0x18f   :  { %v161_v26 = vadd.f32 %v141_v21, %v349_v29 }
 0x194   :  { %v139_v16 = vpop.xlane.xlu2 %138 }
 0x195   :  { %220 = vlog2.f32 %v139_v16 }
 0x19b   :  { %v221_v20 = vpop.eup %220 }
 0x19c   :  { %v145_v24 = vmul.f32 0.6931472, %v221_v20 }
 0x19e   :  { %v163_v31 = vadd.f32 %v145_v24, %v121_v51 }
 0x1ed   :  { %v154_v25 = vpop.xlane.xlu0 %153 }
 0x1ee   :  { %v164_v30 = vsub.f32 %v161_v26, %v154_v25 }
 0x1f0   :  { %v174_v36 = vperm.slane %v164_v30, %v333_v9 }
 0x1f5   :  { %v157_v22 = vpop.xlane.xlu1 %156 }
 0x1f6   :  { %v165_v28 = vsub.f32 %v162_v23, %v157_v22 }
 0x1f8   :  { %v176_v33 = vperm.slane %v165_v28, %v175_v27 }
 0x1fa   :  { %v178_v37 = vsel %vm177_vm10, %v176_v33, %v174_v36 }
 0x1fd   :  { %v160_v34 = vpop.xlane.xlu2 %159 }
 0x1fe   :  { %v166_v35 = vsub.f32 %v163_v31, %v160_v34 }
 0x200   :  { %v180_v29 = vperm.slane %v166_v35, %v179_v32 }
 0x202   :  { %v182_v38 = vsel %vm181_vm11, %v180_v29, %v178_v37 }
 0x203   :  { %v184_v39 = vsel %vm170_vm12, %v182_v38, 0.0 }
 0x204   :  { %186 = vst.msk [vmem:[#allocation7] sm:$0x1] %vm185_vm13, %v184_v39 }
 0x205   :  { %197 = dma.vmem_to_hbm [thread:$0]  %s193_s1, 16, %s195_s23, [#allocation4]  }
 0x206   :  { %298 = dma.done.wait [#allocation4], 16  }
 0x207   :  { %299 = vsyncadd [#allocation4], 4294967280 }
 0x208   :  { %202 = vsyncpa [#allocation3], 1 }
 0x209   :  { %203 = vsyncpa [#allocation6], 1 }
 0x20a   :  { %204 = vsyncpa [#allocation4], 1 }

</bundles_post_ra>
